<compile_context>
chip_gen: v7x
topology: tpu7x:2x2x1
jax: 0.10.0
libtpu: 0.0.40
codegen_flags: <defaults>
</compile_context>

<pallas_src>
import math
from functools import partial

import jax
import jax.numpy as jnp
from jax.experimental import pallas as pl
from jax.experimental.pallas import tpu as pltpu


def _round_up(x, m):
    return (x + m - 1) // m * m


# ----------------------------- Pallas kernel ---------------------------------
def _actor_critic_kernel(x_ref, w_ref, b_ref, h_ref, out_ref, *, in_p, lane):
    # w_ref (packed, lane-dense; every slice starts on an 8-row boundary):
    #   rows [0, in_p)            : W1 (num_inputs x h0, zero padded)
    #   rows [in_p, in_p + lane)  : W2 (h0 x h1, zero padded)
    # b_ref: row 0 = b1, row 1 = b2  (zero padded to `lane` columns)
    # h_ref (narrow head slab, out_lane columns):
    #   rows [0, lane)            : [W_mean | W_value] (zero padded)
    #   row  lane                 : [b_mean | b_value] (zero padded)
    x = x_ref[...]
    w1 = w_ref[0:in_p, :]
    w2 = w_ref[in_p:in_p + lane, :]
    b = b_ref[...]

    # hidden layer 1 / 2: Linear + Tanh (padded lanes stay exactly 0: tanh(0 + 0) = 0)
    h = jnp.tanh(jnp.dot(x, w1, preferred_element_type=jnp.float32) + b[0:1, :])
    h = jnp.tanh(jnp.dot(h, w2, preferred_element_type=jnp.float32) + b[1:2, :])

    # fused mean+value head, narrow (tb, out_lane) store -> minimal writeback bytes
    wh = h_ref[0:lane, :]
    bh = h_ref[lane:lane + 1, :]
    out_ref[...] = jnp.dot(h, wh, preferred_element_type=jnp.float32) + bh


# ------------------------------- wrapper --------------------------------------
def pack_params(params, num_inputs, num_hidden_neurons, num_outputs):
    """Packs module parameters into 3 contiguous buffers + precomputed std.

    Call once per parameter update (std must be recomputed whenever log_std changes).
    """
    (w1, b1, w2, b2, wm, bm, wv, bv, log_std) = params
    h0, h1 = num_hidden_neurons
    in_p = _round_up(num_inputs, 8)
    lane = _round_up(max(h0, h1), 128)
    n_head = num_outputs + 1  # mean columns + 1 value column
    out_lane = _round_up(n_head, 8) if n_head <= 128 else _round_up(n_head, 128)

    def pad2(a, rows, cols):
        return jnp.pad(a, ((0, rows - a.shape[0]), (0, cols - a.shape[1])))

    # hidden-layer weights: one slab, `lane` columns
    w_packed = jnp.concatenate(
        [pad2(w1, in_p, lane), pad2(w2, lane, lane)], axis=0)          # (in_p + lane, lane)
    b_packed = jnp.concatenate(
        [pad2(b1, 1, lane), pad2(b2, 1, lane)], axis=0)                # (2, lane)

    # fused heads: narrow slab, `out_lane` columns; bias in row `lane`
    wh = pad2(jnp.concatenate([wm, wv], axis=1), lane, out_lane)       # (lane, out_lane)
    bh = pad2(jnp.concatenate([bm, bv], axis=1), 8, out_lane)          # (8, out_lane)
    heads_packed = jnp.concatenate([wh, bh], axis=0)                   # (lane + 8, out_lane)

    std = jnp.exp(log_std)  # state independent: hoisted out of the kernel
    return w_packed, b_packed, heads_packed, std, in_p, lane, out_lane


def actor_critic_forward(x, packed, *, num_outputs, block_b=2048, min_grid_steps=1):
    """Runs the full forward pass. Returns (mean, std, value).

    block_b: row tile (sweep 2048-8192 for large PPO rollout batches).
    min_grid_steps: set >=2 on v7x for mid-size batches so the "parallel" batch axis
                    can be sharded across both TensorCores.
    """
    w_packed, b_packed, heads_packed, std, in_p, lane, out_lane = packed
    B, num_inputs = x.shape

    # pick tile so that b_pad is an exact multiple of tb (no partial last block)
    b8 = _round_up(B, 8)
    tb = min(block_b, b8)
    if min_grid_steps > 1 and b8 >= min_grid_steps * 8:
        tb = min(tb, _round_up(-(-b8 // min_grid_steps), 8))
    b_pad = _round_up(b8, tb)
    grid = (b_pad // tb,)

    # skip the wrapper-side pad entirely when the input is already aligned
    if (b_pad, in_p) != (B, num_inputs):
        xp = jnp.pad(x, ((0, b_pad - B), (0, in_p - num_inputs)))
    else:
        xp = x

    kernel = partial(_actor_critic_kernel, in_p=in_p, lane=lane)

    out = pl.pallas_call(
        kernel,
        out_shape=jax.ShapeDtypeStruct((b_pad, out_lane), jnp.float32),
        grid_spec=pltpu.PrefetchScalarGridSpec(
            num_scalar_prefetch=0,
            grid=grid,
            in_specs=[
                pl.BlockSpec((tb, in_p), lambda i: (i, 0)),            # x: blocked on rows
                pl.BlockSpec(w_packed.shape, lambda i: (0, 0)),        # hidden weights: resident
                pl.BlockSpec(b_packed.shape, lambda i: (0, 0)),        # hidden biases: resident
                pl.BlockSpec(heads_packed.shape, lambda i: (0, 0)),    # fused head slab: resident
            ],
            out_specs=pl.BlockSpec((tb, out_lane), lambda i: (i, 0)),  # narrow output slab
        ),
        compiler_params=pltpu.CompilerParams(dimension_semantics=("parallel",)),
    )(xp, w_packed, b_packed, heads_packed)

    mean = out[:B, :num_outputs]
    value = out[:B, num_outputs:num_outputs + 1]
    return mean, std, value


# --------------------------- parameter construction ---------------------------
def xavier_normal(key, fan_in, fan_out):
    # nn.init.xavier_normal_: std = gain * sqrt(2 / (fan_in + fan_out)), gain = 1
    std = math.sqrt(2.0 / (fan_in + fan_out))
    # stored as (in, out) so the kernel computes x @ W (equivalent to PyTorch x @ W^T)
    return jax.random.normal(key, (fan_in, fan_out), dtype=jnp.float32) * std


def make_params(key, num_inputs, num_hidden_neurons, num_outputs, std=1.0):
    assert len(num_hidden_neurons) == 2, "this script builds the 2-hidden-layer case"
    k1, k2, k3, k4 = jax.random.split(key, 4)
    h0, h1 = num_hidden_neurons

    w1 = xavier_normal(k1, num_inputs, h0)
    b1 = jnp.zeros((1, h0), jnp.float32)
    w2 = xavier_normal(k2, h0, h1)
    b2 = jnp.zeros((1, h1), jnp.float32)
    wm = xavier_normal(k3, h1, num_outputs)
    bm = jnp.zeros((1, num_outputs), jnp.float32)
    wv = xavier_normal(k4, h1, 1)
    bv = jnp.zeros((1, 1), jnp.float32)
    log_std = jnp.full((1, num_outputs), math.log(std), jnp.float32)
    return (w1, b1, w2, b2, wm, bm, wv, bv, log_std)


def reference_forward(x, params):
    """Pure-JAX reference mirroring the PyTorch forward exactly."""
    (w1, b1, w2, b2, wm, bm, wv, bv, log_std) = params
    h = jnp.tanh(x @ w1 + b1)
    h = jnp.tanh(h @ w2 + b2)
    mean = h @ wm + bm
    std = jnp.exp(log_std)
    value = h @ wv + bv
    return mean, std, value


# ----------------------------------- main -------------------------------------
if __name__ == "__main__":
    key = jax.random.PRNGKey(0)
    k_x, k_p = jax.random.split(key)

    batch = 8
    num_inputs = 16
    num_hidden_neurons = [32, 32]
    num_outputs = 4

    x = jax.random.normal(k_x, (batch, num_inputs), dtype=jnp.float32)
    params = make_params(k_p, num_inputs, num_hidden_neurons, num_outputs, std=1.0)
    packed = pack_params(params, num_inputs, num_hidden_neurons, num_outputs)

    mean, std, value = actor_critic_forward(x, packed, num_outputs=num_outputs)
    jax.block_until_ready((mean, std, value))

    # correctness check against plain-JAX reference
    mean_ref, std_ref, value_ref = reference_forward(x, params)
    assert mean.shape == (batch, num_outputs)
    assert std.shape == (1, num_outputs)
    assert value.shape == (batch, 1)
    assert jnp.allclose(mean, mean_ref, atol=1e-5, rtol=1e-5)
    assert jnp.allclose(std, std_ref, atol=1e-6, rtol=1e-6)
    assert jnp.allclose(value, value_ref, atol=1e-5, rtol=1e-5)

    # also exercise a larger, non-tile-aligned batch with multiple grid steps
    x_big = jax.random.normal(k_x, (1000, num_inputs), dtype=jnp.float32)
    mean_b, _, value_b = actor_critic_forward(
        x_big, packed, num_outputs=num_outputs, block_b=256, min_grid_steps=2)
    jax.block_until_ready((mean_b, value_b))
    mean_br, _, value_br = reference_forward(x_big, params)
    assert jnp.allclose(mean_b, mean_br, atol=1e-5, rtol=1e-5)
    assert jnp.allclose(value_b, value_br, atol=1e-5, rtol=1e-5)

    print("KERNEL_OK")
</pallas_src>

<mosaic_0001>
module attributes {stable_mosaic.version = 11 : i64} {
  func.func @_actor_critic_kernel(%arg0: i32, %arg1: memref<8x16xf32, #tpu.memory_space<vmem>>, %arg2: memref<144x128xf32, #tpu.memory_space<vmem>>, %arg3: memref<2x128xf32, #tpu.memory_space<vmem>>, %arg4: memref<136x8xf32, #tpu.memory_space<vmem>>, %arg5: memref<8x8xf32, #tpu.memory_space<vmem>>) attributes {dimension_semantics = [#tpu.dimension_semantics<parallel>], iteration_bounds = array<i64: 1>, scalar_prefetch = 0 : i64, scratch_operands = 0 : i64, tpu.core_type = #tpu.core_type<tc>, window_params = [{transform_indices = @transform_0, window_bounds = array<i64: 8, 16>}, {pipeline_mode = #tpu.pipeline_mode<synchronous>, transform_indices = @transform_1, window_bounds = array<i64: 144, 128>}, {pipeline_mode = #tpu.pipeline_mode<synchronous>, transform_indices = @transform_2, window_bounds = array<i64: 2, 128>}, {pipeline_mode = #tpu.pipeline_mode<synchronous>, transform_indices = @transform_3, window_bounds = array<i64: 136, 8>}, {transform_indices = @transform_4, window_bounds = array<i64: 8, 8>}]} {
    %c0 = arith.constant 0 : index
    %c0_0 = arith.constant 0 : index
    %0 = vector.load %arg1[%c0, %c0_0] : memref<8x16xf32, #tpu.memory_space<vmem>>, vector<8x16xf32>
    %c0_1 = arith.constant 0 : index
    %c0_2 = arith.constant 0 : index
    %1 = vector.load %arg2[%c0_1, %c0_2] : memref<144x128xf32, #tpu.memory_space<vmem>>, vector<16x128xf32>
    %c16 = arith.constant 16 : index
    %c0_3 = arith.constant 0 : index
    %2 = vector.load %arg2[%c16, %c0_3] : memref<144x128xf32, #tpu.memory_space<vmem>>, vector<128x128xf32>
    %c0_4 = arith.constant 0 : index
    %c0_5 = arith.constant 0 : index
    %3 = vector.load %arg3[%c0_4, %c0_5] : memref<2x128xf32, #tpu.memory_space<vmem>>, vector<2x128xf32>
    %cst = arith.constant dense<0.000000e+00> : vector<8x128xf32>
    %4 = tpu.matmul %0, %1, %cst {dimension_numbers = #tpu.dot_dimension_numbers<[1], [0], [0], [1], [0, 0, 1, 1], [], []>} : vector<8x16xf32>, vector<16x128xf32>, vector<8x128xf32> -> vector<8x128xf32>
    %5 = vector.extract_strided_slice %3 {offsets = [0, 0], sizes = [1, 128], strides = [1, 1]} : vector<2x128xf32> to vector<1x128xf32>
    %6 = vector.broadcast %5 : vector<1x128xf32> to vector<8x128xf32>
    %7 = arith.addf %4, %6 : vector<8x128xf32>
    %8 = math.tanh %7 : vector<8x128xf32>
    %cst_6 = arith.constant dense<0.000000e+00> : vector<8x128xf32>
    %9 = tpu.matmul %8, %2, %cst_6 {dimension_numbers = #tpu.dot_dimension_numbers<[1], [0], [0], [1], [0, 0, 1, 1], [], []>} : vector<8x128xf32>, vector<128x128xf32>, vector<8x128xf32> -> vector<8x128xf32>
    %10 = vector.extract_strided_slice %3 {offsets = [1, 0], sizes = [1, 128], strides = [1, 1]} : vector<2x128xf32> to vector<1x128xf32>
    %11 = vector.broadcast %10 : vector<1x128xf32> to vector<8x128xf32>
    %12 = arith.addf %9, %11 : vector<8x128xf32>
    %13 = math.tanh %12 : vector<8x128xf32>
    %c0_7 = arith.constant 0 : index
    %c0_8 = arith.constant 0 : index
    %14 = vector.load %arg4[%c0_7, %c0_8] : memref<136x8xf32, #tpu.memory_space<vmem>>, vector<128x8xf32>
    %c128 = arith.constant 128 : index
    %c0_9 = arith.constant 0 : index
    %15 = vector.load %arg4[%c128, %c0_9] : memref<136x8xf32, #tpu.memory_space<vmem>>, vector<1x8xf32>
    %cst_10 = arith.constant dense<0.000000e+00> : vector<8x8xf32>
    %16 = tpu.matmul %13, %14, %cst_10 {dimension_numbers = #tpu.dot_dimension_numbers<[1], [0], [0], [1], [0, 0, 1, 1], [], []>} : vector<8x128xf32>, vector<128x8xf32>, vector<8x8xf32> -> vector<8x8xf32>
    %17 = vector.broadcast %15 : vector<1x8xf32> to vector<8x8xf32>
    %18 = arith.addf %16, %17 : vector<8x8xf32>
    %c0_11 = arith.constant 0 : index
    %c0_12 = arith.constant 0 : index
    %19 = vector.load %arg5[%c0_11, %c0_12] : memref<8x8xf32, #tpu.memory_space<vmem>>, vector<8x8xf32>
    tpu.vector_store %arg5[%c0_11, %c0_12], %18 {strides = array<i32>} : memref<8x8xf32, #tpu.memory_space<vmem>>, vector<8x8xf32>,
    return
  }
  func.func @transform_0(%arg0: i32) -> (i32, i32) {
    %c0_i32 = arith.constant 0 : i32
    %c0_i32_0 = arith.constant 0 : i32
    return %arg0, %c0_i32 : i32, i32
  }
  func.func @transform_1(%arg0: i32) -> (i32, i32) {
    %c0_i32 = arith.constant 0 : i32
    %c0_i32_0 = arith.constant 0 : i32
    %c0_i32_1 = arith.constant 0 : i32
    return %c0_i32, %c0_i32_0 : i32, i32
  }
  func.func @transform_2(%arg0: i32) -> (i32, i32) {
    %c0_i32 = arith.constant 0 : i32
    %c0_i32_0 = arith.constant 0 : i32
    %c0_i32_1 = arith.constant 0 : i32
    return %c0_i32, %c0_i32_0 : i32, i32
  }
  func.func @transform_3(%arg0: i32) -> (i32, i32) {
    %c0_i32 = arith.constant 0 : i32
    %c0_i32_0 = arith.constant 0 : i32
    %c0_i32_1 = arith.constant 0 : i32
    return %c0_i32, %c0_i32_0 : i32, i32
  }
  func.func @transform_4(%arg0: i32) -> (i32, i32) {
    %c0_i32 = arith.constant 0 : i32
    %c0_i32_0 = arith.constant 0 : i32
    return %arg0, %c0_i32 : i32, i32
  }
}

</mosaic_0001>

<bundles_post_ra>
// kernel: tpu_custom_call.1
= control target key start
LH: loop header
LB: loop body
LE: loop exit
PB: predicated region body
PF: predicated region fallthrough
CT: control target
= control target key end

     0   :  { %v498_v2 = vmov 0.0|0.0   ;;  %vm499_vm0 = vmmov 0   ;;  %v500_v4 = vmov 0.0   ;;  %vm42_vm1 = vcmask 130048   ;;  %s670_s0 = inlined_call_operand.vmem [shape: f32[8,16], index: 0, kind: input, shape index: {}]   ;;  %s671_s1 = inlined_call_operand.vmem [shape: f32[144,128], index: 1, kind: input, shape index: {}]   ;;  %s672_s2 = inlined_call_operand.vmem [shape: f32[2,128], index: 2, kind: input, shape index: {}]   ;;  %s673_s3 = inlined_call_operand.vmem [shape: f32[136,8], index: 3, kind: input, shape index: {}]   ;;  %s674_s4 = inlined_call_operand.hbm [shape: f32[8,8], index: 4, kind: output, shape index: {}]  }
   0x1   :  { %v19_v0 = vld [vmem:[%s671_s1] sm:$0xff]  ;;  %v20_v1 = vld [vmem:[%s671_s1 + $0x8] sm:$0xff]  ;;  %415 = vmatprep.subr.bf16.mxu0 %v498_v2  ;;  %342 = vmatprep.mubr.msk.f32.mxu0 %vm499_vm0, %v500_v4  ;;  %v21_v5 = vld [vmem:[%s671_s1 + $0x10] sm:$0xff] }
   0x2   :  { %v416_v3 = vpack.c.bf16 %v20_v1, %v19_v0  ;;  %v22_v6 = vld [vmem:[%s671_s1 + $0x18] sm:$0xff]  ;;  %v23_v7 = vld [vmem:[%s671_s1 + $0x20] sm:$0xff]  ;;  %418 = vmatprep.subr.bf16.mxu1 %v498_v2  ;;  %v24_v9 = vld [vmem:[%s671_s1 + $0x28] sm:$0xff]  ;;  %377 = vmatprep.mubr.msk.f32.mxu1 %vm499_vm0, %v500_v4 }
   0x3   :  { %v419_v8 = vpack.c.bf16 %v22_v6, %v21_v5  ;;  %v18_v10 = vld [vmem:[%s670_s0] sm:$0xff]  ;;  %v422_v11 = vpack.c.bf16 %v24_v9, %v23_v7 }
   0x4   :  { %417 = vmatpush3.bf16.msra.mxu0 %v416_v3 }
   0x5   :  { %420 = vmatpush3.bf16.msra.mxu1 %v419_v8  ;;  %442 = vmatprep.subr.bf16.mxu0 %v498_v2 }
   0x6   :  { %9 = vsyncpa [#allocation3], 0  ;;  %421 = vmatprep.subr.bf16.mxu1 %v498_v2  ;;  %v25_v12 = vld [vmem:[%s671_s1 + $0x30] sm:$0xff]  ;;  %v26_v13 = vld [vmem:[%s671_s1 + $0x38] sm:$0xff]  ;;  %v38_v45 = vlaneseq  ;;  %vm283_vm2 = vcmask 64512  }
   0x7   :  { %343 = vmatmul.mubr.msk.f32.vlgmr.msra.gmra.mrb[0].mxu0 %vm42_vm1, %v18_v10  ;;  %v425_v14 = vpack.c.bf16 %v26_v13, %v25_v12  ;;  %v27_v15 = vld [vmem:[%s671_s1 + $0x40] sm:$0xff]  ;;  %v28_v16 = vld [vmem:[%s671_s1 + $0x48] sm:$0xff]  ;;  %v29_v18 = vld [vmem:[%s671_s1 + $0x50] sm:$0xff] }
   0x8   :  { %412 = vmatprep.mubr.msk.f32.mxu0 %vm499_vm0, %v500_v4  ;;  %v428_v17 = vpack.c.bf16 %v28_v16, %v27_v15  ;;  %v30_v19 = vld [vmem:[%s671_s1 + $0x58] sm:$0xff]  ;;  %v31_v21 = vld [vmem:[%s671_s1 + $0x60] sm:$0xff]  ;;  %v32_v22 = vld [vmem:[%s671_s1 + $0x68] sm:$0xff]  ;;  %v39_v46 = vshrl.u32 %v38_v45, 7 }
   0x9   :  { %423 = vmatpush3.bf16.msra.mxu1 %v422_v11  ;;  %v431_v20 = vpack.c.bf16 %v30_v19, %v29_v18  ;;  %v434_v23 = vpack.c.bf16 %v32_v22, %v31_v21  ;;  %v33_v24 = vld [vmem:[%s671_s1 + $0x70] sm:$0xff]  ;;  %v34_v25 = vld [vmem:[%s671_s1 + $0x78] sm:$0xff]  ;;  %v35_v27 = vld [vmem:[%s671_s1 + $0x80] sm:$0xff] }
   0xa   :  { %424 = vmatprep.subr.bf16.mxu1 %v498_v2  ;;  %v437_v26 = vpack.c.bf16 %v34_v25, %v33_v24  ;;  %v36_v28 = vld [vmem:[%s671_s1 + $0x88] sm:$0xff]  ;;  %v192_v30 = vld [vmem:[%s673_s3] sm:$0xff]  ;;  %v194_v32 = vld [vmem:[%s673_s3 + $0x10] sm:$0xff]  ;;  %v40_v47 = vsub.s32 0, %v39_v46  ;;  %v119_v63 = vsub.s32 1, %v39_v46  ;;  %s501_s1 = smov [#allocation2]  }
   0xb   :  { %v440_v29 = vpack.c.bf16 %v36_v28, %v35_v27  ;;  %v193_v31 = vld [vmem:[%s673_s3 + $0x8] sm:$0xff]  ;;  %v195_v34 = vld [vmem:[%s673_s3 + $0x18] sm:$0xff]  ;;  %v196_v36 = vld [vmem:[%s673_s3 + $0x20] sm:$0xff]  ;;  %s291_s0 = sshll.u32 %s501_s1, 4  ;;  %s292_s0 = int_to_ptr.vmem [resolvable:$true] %s291_s0 }
   0xc   :  { %v443_v33 = vpack.c.bf16 %v193_v31, %v192_v30  ;;  %v446_v35 = vpack.c.bf16 %v195_v34, %v194_v32  ;;  %v197_v37 = vld [vmem:[%s673_s3 + $0x28] sm:$0xff]  ;;  %v198_v39 = vld [vmem:[%s673_s3 + $0x30] sm:$0xff]  ;;  %v199_v40 = vld [vmem:[%s673_s3 + $0x38] sm:$0xff]  ;;  %s474_s7 = scalar_lea.vmem %s292_s0, 128  ;;  %p479_p1 = scmp.lt.s32.totalorder %s292_s0, %s292_s0 }
   0xd   :  { %426 = vmatpush3.bf16.msra.mxu1 %v425_v14  ;;  %v449_v38 = vpack.c.bf16 %v197_v37, %v196_v36  ;;  %v452_v41 = vpack.c.bf16 %v199_v40, %v198_v39  ;;  %v200_v42 = vld [vmem:[%s673_s3 + $0x40] sm:$0xff]  ;;  %v201_v43 = vld [vmem:[%s673_s3 + $0x48] sm:$0xff]  ;;  %v202_v54 = vld [vmem:[%s673_s3 + $0x50] sm:$0xff]  ;;  %p475_p0 = scmp.ne.s32.totalorder %s292_s0, %s474_s7  ;;  %p480_p2 = scmp.lt.s32.totalorder %s474_s7, %s474_s7 }
   0xe   :  { %427 = vmatprep.subr.bf16.mxu1 %v498_v2  ;;  %444 = vmatpush3.bf16.msra.mxu0 %v443_v33  ;;  %v455_v44 = vpack.c.bf16 %v201_v43, %v200_v42  ;;  %v37_v48 = vld [vmem:[%s672_s2] sm:$0x3]  ;;  %v203_v55 = vld [vmem:[%s673_s3 + $0x58] sm:$0xff]  ;;  %v205_v58 = vld [vmem:[%s673_s3 + $0x68] sm:$0xff] }
   0xf   :  { %445 = vmatprep.subr.bf16.mxu0 %v498_v2  ;;  %v41_v49 = vrot.slane %v37_v48, %v40_v47  ;;  %v458_v56 = vpack.c.bf16 %v203_v55, %v202_v54  ;;  %v204_v57 = vld [vmem:[%s673_s3 + $0x60] sm:$0xff]  ;;  %v206_v60 = vld [vmem:[%s673_s3 + $0x70] sm:$0xff]  ;;  %v207_v61 = vld [vmem:[%s673_s3 + $0x78] sm:$0xff]  ;;  %v120_v0 = vrot.slane %v37_v48, %v119_v63  ;;  %p481_p3 = por %p480_p2, %p479_p1 }
  0x10   :  { %v461_v59 = vpack.c.bf16 %v205_v58, %v204_v57  ;;  %v464_v62 = vpack.c.bf16 %v207_v61, %v206_v60  ;;  %v300_v6 = vld [vmem:[%s673_s3 + $0x80] ss:$0 sm:$0xff] }
  0x11   :  { %429 = vmatpush3.bf16.msra.mxu1 %v428_v17  ;;  %p482_p4 = pnand %p481_p3, %p475_p0 }
  0x12   :  { %430 = vmatprep.subr.bf16.mxu1 %v498_v2  ;;  %447 = vmatpush3.bf16.msra.mxu0 %v446_v35 }
  0x13   :  { %448 = vmatprep.subr.bf16.mxu0 %v498_v2 }
  0x15   :  { %432 = vmatpush3.bf16.msra.mxu1 %v431_v20 }
  0x16   :  { %433 = vmatprep.subr.bf16.mxu1 %v498_v2  ;;  %450 = vmatpush3.bf16.msra.mxu0 %v449_v38 }
  0x17   :  { %451 = vmatprep.subr.bf16.mxu0 %v498_v2 }
  0x19   :  { %435 = vmatpush3.bf16.msra.mxu1 %v434_v23 }
  0x1a   :  { %436 = vmatprep.subr.bf16.mxu1 %v498_v2  ;;  %453 = vmatpush3.bf16.msra.mxu0 %v452_v41 }
  0x1b   :  { %454 = vmatprep.subr.bf16.mxu0 %v498_v2 }
  0x1d   :  { %438 = vmatpush3.bf16.msra.mxu1 %v437_v26 }
  0x1e   :  { %439 = vmatprep.subr.bf16.mxu1 %v498_v2  ;;  %456 = vmatpush3.bf16.msra.mxu0 %v455_v44 }
  0x1f   :  { %457 = vmatprep.subr.bf16.mxu0 %v498_v2 }
  0x21   :  { %441 = vmatpush3.bf16.msra.mxu1 %v440_v29 }
  0x22   :  { %459 = vmatpush3.bf16.msra.mxu0 %v458_v56 }
  0x23   :  { %460 = vmatprep.subr.bf16.mxu0 %v498_v2 }
  0x26   :  { %462 = vmatpush3.bf16.msra.mxu0 %v461_v59 }
  0x27   :  { %463 = vmatprep.subr.bf16.mxu0 %v498_v2 }
  0x2a   :  { %465 = vmatpush3.bf16.msra.mxu0 %v464_v62 }
  0xda   :  { %v112_v50 = vpop.f32.mrb[0].mxu0 }
  0xdb   :  { %v113_v51 = vadd.f32 %v112_v50, %v41_v49  ;;  %v344_v52 = vpop.f32.mrb[1].mxu0 }
  0xdd   :  { %470 = vtanh.f32 %v113_v51 }
  0xe7   :  { %v471_v53 = vpop.eup %470 }
  0xe8   :  { %378 = vmatmul.mubr.f32.vlgmr.msra.gmra.mrb[0].mxu1 %v471_v53 }
 0x1bb   :  { %v187_v1 = vpop.f32.mrb[0].mxu1 }
 0x1bc   :  { %v188_v3 = vadd.f32 %v187_v1, %v120_v0  ;;  %v379_v4 = vpop.f32.mrb[1].mxu1 }
 0x1be   :  { %472 = vtanh.f32 %v188_v3 }
 0x1c8   :  { %v473_v5 = vpop.eup %472 }
 0x1c9   :  { %413 = vmatmul.mubr.f32.vlgmr.msra.gmra.mrb[2].mxu0 %v473_v5 }
 0x29c   :  { %v279_v7 = vpop.f32.mrb[2].mxu0 }
 0x29d   :  { %v280_v8 = vadd.f32 %v300_v6, %v279_v7  ;;  %v414_v9 = vpop.f32.mrb[3].mxu0 }
 0x29f   :  { %284 = vst.msk [vmem:[#allocation2] sm:$0xff] %vm283_vm2, %v280_v8 }
 0x2a0   :  { %485 = shalt.err (!%p482_p4)
}
 0x2a1   :  { %s486_s10 = scalar_lea.hbm %s674_s4, 128 }
 0x2a2   :  { %p487_p5 = scmp.ne.s32.totalorder %s674_s4, %s486_s10  ;;  %p490_p6 = scmp.lt.u32.totalorder %s486_s10, %s674_s4 }
 0x2a4   :  { %p492_p7 = pnand %p490_p6, %p487_p5 }
 0x2a6   :  { %495 = shalt.err (!%p492_p7)
}
 0x2a7   :  { %294 = dma.vmem_to_hbm [thread:$0]  %s292_s0, 128, %s674_s4, [#allocation3]  }
 0x2a8   :  { %496 = dma.done.wait [#allocation3], 128  }
 0x2a9   :  { %497 = vsyncadd [#allocation3], 4294967168 }
 0x2aa   :  { %298 = vsyncpa [#allocation3], 1 }

</bundles_post_ra>
